<compile_context>
chip_gen: v7x
topology: tpu7x:2x2x1
jax: 0.10.0
libtpu: 0.0.40
codegen_flags: <defaults>
</compile_context>

<pallas_src>
import math

import jax
import jax.numpy as jnp
from jax import lax
from jax.experimental import pallas as pl
from jax.experimental.pallas import tpu as pltpu


# --------------------------------------------------------------------------
# Kernel body: one (tb, th) output tile.
# --------------------------------------------------------------------------
def _temporal_decay_kernel(d_ref, w_ref, b_ref, o_ref):
    # d_ref: (tb, I), w_ref: (th, I), b_ref: (1, th), o_ref: (tb, th)
    # d @ W.T without materializing W.T: contract the I axis of both operands
    # on the MXU, accumulate in f32.
    acc = lax.dot_general(
        d_ref[...], w_ref[...],
        dimension_numbers=(((1,), (1,)), ((), ())),
        preferred_element_type=jnp.float32,
    )
    acc = acc + b_ref[...].astype(jnp.float32)      # bias broadcast over batch
    # exp(-relu(x)); EUP exp + VPU max, epilogue kept in f32.
    o_ref[...] = jnp.exp(-jnp.maximum(acc, 0.0)).astype(o_ref.dtype)


# --------------------------------------------------------------------------
# Tiling / VMEM helpers (host-side, trace time).
# --------------------------------------------------------------------------
def _vmem_budget_bytes():
    """~75% of physical VMEM (headroom for Mosaic internal scratch)."""
    try:
        cap = int(pltpu.get_tpu_info().vmem_capacity_bytes)
    except Exception:
        cap = 64 << 20           # v7x has the smallest per-TC VMEM; safe floor
    return (cap * 3) // 4


def _tile_candidates(dim, quantum):
    """Full extent first, then even divisors that are multiples of `quantum`,
    largest first (never returns tiny tiles before larger ones)."""
    cands = [dim]
    c = (dim // quantum) * quantum
    while c > 0:
        if c != dim and dim % c == 0:
            cands.append(c)
        c -= quantum
    return cands


def _footprint_bytes(tb, th, i_dim, in_itemsize, out_itemsize):
    # Conservative: count every operand double-buffered (W/b actually stay
    # resident when their block index is constant across steps).
    return 2 * (tb * i_dim * in_itemsize      # d tile
                + th * i_dim * in_itemsize    # W tile
                + th * 4                      # bias tile (f32)
                + tb * th * out_itemsize)     # out tile


# --------------------------------------------------------------------------
# Wrapper.
# --------------------------------------------------------------------------
def temporal_decay(d, W, b):
    """gamma = exp(-relu(d @ W.T + b)).

    d: (B, I) or (T, B, I);  W: (H, I);  b: (H,).
    Returns (B, H) or (T, B, H) in d.dtype.
    """
    squeeze_time = (d.ndim == 2)
    if squeeze_time:
        d = d[None]                             # (1, B, I)
    T, B, I = d.shape
    H, I_w = W.shape
    assert I_w == I, (I_w, I)
    b2 = b.reshape(1, H)                        # 2-D for TPU vreg layout

    in_itemsize = jnp.dtype(d.dtype).itemsize
    out_itemsize = in_itemsize
    budget = _vmem_budget_bytes()

    # Prefer ONE full-extent block per timestep: at RITS shapes the op is
    # launch/pipeline-overhead bound (~0.35us per grid step), so extra grid
    # steps are pure cost.  Tile only when the footprint would not fit VMEM.
    tb, th = B, H
    if _footprint_bytes(tb, th, I, in_itemsize, out_itemsize) > budget:
        found = False
        for th_c in _tile_candidates(H, 128):
            for tb_c in _tile_candidates(B, 8):
                if _footprint_bytes(tb_c, th_c, I, in_itemsize,
                                    out_itemsize) <= budget:
                    tb, th = tb_c, th_c
                    found = True
                    break
            if found:
                break
        if not found:                           # pathological (huge I): smallest legal
            tb = _tile_candidates(B, 8)[-1]
            th = _tile_candidates(H, 128)[-1]

    nb, nh = B // tb, H // th
    grid = (T, nb, nh)

    need = _footprint_bytes(tb, th, I, in_itemsize, out_itemsize)
    vmem_limit = None
    if need > (12 << 20):     # v5e's default scoped VMEM is 16 MiB -> raise explicitly
        vmem_limit = min(need + (4 << 20), budget)

    cost = pl.CostEstimate(
        flops=2 * T * B * I * H,
        transcendentals=T * B * H,
        # W / b are re-fetched once per (t, batch-tile) since the hidden axis
        # is innermost; d is fetched once per (t, batch-tile).
        bytes_accessed=(T * B * I * in_itemsize            # d
                        + T * nb * H * I * in_itemsize     # W (re-fetch factor nb)
                        + T * nb * H * 4                   # b
                        + T * B * H * out_itemsize),       # out
    )

    out = pl.pallas_call(
        _temporal_decay_kernel,
        out_shape=jax.ShapeDtypeStruct((T, B, H), d.dtype),
        grid=grid,
        in_specs=[
            # d: one timestep x one batch tile (leading time dim squeezed).
            pl.BlockSpec((None, tb, I), lambda t, i, j: (t, i, 0)),
            # W: constant in t and batch tile -> DMA'd once per hidden tile
            # and kept VMEM-resident across the whole time/batch sweep.
            pl.BlockSpec((th, I), lambda t, i, j: (j, 0)),
            # bias: constant in t and batch tile.
            pl.BlockSpec((1, th), lambda t, i, j: (0, j)),
        ],
        out_specs=pl.BlockSpec((None, tb, th), lambda t, i, j: (t, i, j)),
        compiler_params=pltpu.CompilerParams(
            # All grid axes are independent (no reduction axis); "parallel"
            # lets megacore (v7x) shard the T / batch axes across both TCs.
            dimension_semantics=("parallel", "parallel", "parallel"),
            vmem_limit_bytes=vmem_limit,
        ),
        cost_estimate=cost,
    )(d, W, b2)

    return out[0] if squeeze_time else out


# --------------------------------------------------------------------------
# Reference + checks.
# --------------------------------------------------------------------------
def reference(d, W, b):
    return jnp.exp(-jnp.maximum(d @ W.T + b, 0.0))


def _run_case(key, d_shape, H):
    I = d_shape[-1]
    k_d, k_w, k_b = jax.random.split(key, 3)
    # Parameter init mirroring reset_parameters(): uniform(-stdv, stdv),
    # stdv = 1/sqrt(rnn_hid_size).
    stdv = 1.0 / math.sqrt(H)
    W = jax.random.uniform(k_w, (H, I), minval=-stdv, maxval=stdv,
                           dtype=jnp.float32)
    b = jax.random.uniform(k_b, (H,), minval=-stdv, maxval=stdv,
                           dtype=jnp.float32)
    d = jax.random.uniform(k_d, d_shape, dtype=jnp.float32) * 5.0

    out = jax.block_until_ready(temporal_decay(d, W, b))
    ref = reference(d, W, b)
    assert out.shape == ref.shape, (out.shape, ref.shape)
    assert jnp.allclose(out, ref, atol=1e-4, rtol=1e-4), \
        float(jnp.max(jnp.abs(out - ref)))


if __name__ == "__main__":
    key = jax.random.PRNGKey(0)
    k0, k1, k2 = jax.random.split(key, 3)

    # Per-step call at small shapes (single full-extent block, grid (1,1,1)).
    _run_case(k0, (8, 16), H=32)
    # RITS-like shapes (B=64, I=35, H=64).
    _run_case(k1, (64, 35), H=64)
    # Time-batched call: weights DMA'd once, resident for the whole sequence.
    _run_case(k2, (6, 32, 35), H=64)

    print("KERNEL_OK")
</pallas_src>

<mosaic_0001>
module attributes {stable_mosaic.version = 11 : i64} {
  func.func @_temporal_decay_kernel(%arg0: i32, %arg1: i32, %arg2: i32, %arg3: memref<1x8x16xf32, #tpu.memory_space<vmem>>, %arg4: memref<32x16xf32, #tpu.memory_space<vmem>>, %arg5: memref<1x32xf32, #tpu.memory_space<vmem>>, %arg6: memref<1x8x32xf32, #tpu.memory_space<vmem>>) attributes {dimension_semantics = [#tpu.dimension_semantics<parallel>, #tpu.dimension_semantics<parallel>, #tpu.dimension_semantics<parallel>], iteration_bounds = array<i64: 1, 1, 1>, scalar_prefetch = 0 : i64, scratch_operands = 0 : i64, tpu.core_type = #tpu.core_type<tc>, window_params = [{transform_indices = @transform_0, window_bounds = array<i64: 1, 8, 16>}, {transform_indices = @transform_1, window_bounds = array<i64: 32, 16>}, {transform_indices = @transform_2, window_bounds = array<i64: 1, 32>}, {transform_indices = @transform_3, window_bounds = array<i64: 1, 8, 32>}]} {
    %c0 = arith.constant 0 : index
    %c0_0 = arith.constant 0 : index
    %c0_1 = arith.constant 0 : index
    %0 = vector.load %arg3[%c0, %c0_0, %c0_1] : memref<1x8x16xf32, #tpu.memory_space<vmem>>, vector<1x8x16xf32>
    %1 = vector.shape_cast %0 : vector<1x8x16xf32> to vector<8x16xf32>
    %c0_2 = arith.constant 0 : index
    %c0_3 = arith.constant 0 : index
    %2 = vector.load %arg4[%c0_2, %c0_3] : memref<32x16xf32, #tpu.memory_space<vmem>>, vector<32x16xf32>
    %cst = arith.constant dense<0.000000e+00> : vector<8x32xf32>
    %3 = tpu.matmul %1, %2, %cst {dimension_numbers = #tpu.dot_dimension_numbers<[1], [1], [0], [0], [0, 0, 1, 0], [], []>} : vector<8x16xf32>, vector<32x16xf32>, vector<8x32xf32> -> vector<8x32xf32>
    %c0_4 = arith.constant 0 : index
    %c0_5 = arith.constant 0 : index
    %4 = vector.load %arg5[%c0_4, %c0_5] : memref<1x32xf32, #tpu.memory_space<vmem>>, vector<1x32xf32>
    %5 = vector.broadcast %4 : vector<1x32xf32> to vector<8x32xf32>
    %6 = arith.addf %3, %5 : vector<8x32xf32>
    %cst_6 = arith.constant 0.000000e+00 : f32
    %7 = vector.broadcast %cst_6 : f32 to vector<8x32xf32>
    %8 = arith.maximumf %6, %7 : vector<8x32xf32>
    %cst_7 = arith.constant 0.000000e+00 : f32
    %9 = vector.broadcast %cst_7 : f32 to vector<8x32xf32>
    %10 = arith.subf %9, %8 : vector<8x32xf32>
    %11 = math.exp %10 : vector<8x32xf32>
    %c0_8 = arith.constant 0 : index
    %c0_9 = arith.constant 0 : index
    %c0_10 = arith.constant 0 : index
    %12 = vector.load %arg6[%c0_8, %c0_9, %c0_10] : memref<1x8x32xf32, #tpu.memory_space<vmem>>, vector<1x8x32xf32>
    %13 = vector.shape_cast %12 : vector<1x8x32xf32> to vector<8x32xf32>
    %14 = vector.shape_cast %11 : vector<8x32xf32> to vector<1x8x32xf32>
    tpu.vector_store %arg6[%c0_8, %c0_9, %c0_10], %14 {strides = array<i32>} : memref<1x8x32xf32, #tpu.memory_space<vmem>>, vector<1x8x32xf32>,
    return
  }
  func.func @transform_0(%arg0: i32, %arg1: i32, %arg2: i32) -> (i32, i32, i32) {
    %c0_i32 = arith.constant 0 : i32
    %c0_i32_0 = arith.constant 0 : i32
    return %arg0, %arg1, %c0_i32 : i32, i32, i32
  }
  func.func @transform_1(%arg0: i32, %arg1: i32, %arg2: i32) -> (i32, i32) {
    %c0_i32 = arith.constant 0 : i32
    %c0_i32_0 = arith.constant 0 : i32
    return %arg2, %c0_i32 : i32, i32
  }
  func.func @transform_2(%arg0: i32, %arg1: i32, %arg2: i32) -> (i32, i32) {
    %c0_i32 = arith.constant 0 : i32
    %c0_i32_0 = arith.constant 0 : i32
    return %c0_i32, %arg2 : i32, i32
  }
  func.func @transform_3(%arg0: i32, %arg1: i32, %arg2: i32) -> (i32, i32, i32) {
    %c0_i32 = arith.constant 0 : i32
    return %arg0, %arg1, %arg2 : i32, i32, i32
  }
}

</mosaic_0001>

<bundles_post_ra>
// kernel: tpu_custom_call.1
= control target key start
LH: loop header
LB: loop body
LE: loop exit
PB: predicated region body
PF: predicated region fallthrough
CT: control target
= control target key end

     0   :  { %vm27_vm0 = vcmask 130048   ;;  %v193_v2 = vmov 0.0|0.0   ;;  %vm194_vm2 = vmmov 0   ;;  %v195_v4 = vmov 0.0   ;;  %s250_s0 = inlined_call_operand.vmem [shape: f32[1,8,16], index: 0, kind: input, shape index: {}]   ;;  %s251_s1 = inlined_call_operand.vmem [shape: f32[32,16], index: 1, kind: input, shape index: {}]   ;;  %s252_s2 = inlined_call_operand.vmem [shape: f32[1,32], index: 2, kind: input, shape index: {}]   ;;  %s253_s3 = inlined_call_operand.hbm [shape: f32[1,8,32], index: 3, kind: output, shape index: {}]  }
   0x1   :  { %v16_v0 = vld [vmem:[%s251_s1] sm:$0xff]  ;;  %v17_v1 = vld [vmem:[%s251_s1 + $0x8] sm:$0xff]  ;;  %155 = vmatprep.subr.bf16.mxu0 %v193_v2  ;;  %vm157_vm1 = vmpackc.low %vm27_vm0, %vm27_vm0  ;;  %152 = vmatprep.mubr.msk.f32.mxu0 %vm194_vm2, %v195_v4 }
   0x2   :  { %v156_v3 = vpack.c.bf16 %v17_v1, %v16_v0 }
   0x3   :  { %8 = vsyncpa [#allocation3], 0  ;;  %v18_v5 = vld [vmem:[%s251_s1 + $0x10] sm:$0xff]  ;;  %v19_v6 = vld [vmem:[%s251_s1 + $0x18] sm:$0xff]  ;;  %s196_s1 = smov [#allocation2]   ;;  %vm117_vm3 = vcmask 261120  }
   0x4   :  { %158 = vmatpush3.bf16.xpose.msk.msra.mxu0 %vm157_vm1, %v156_v3  ;;  %v160_v7 = vpack.c.bf16 %v19_v6, %v18_v5  ;;  %v15_v8 = vld [vmem:[%s250_s0] sm:$0xff]  ;;  %s125_s24 = sshll.u32 %s196_s1, 4  ;;  %s126_s24 = int_to_ptr.vmem [resolvable:$true] %s125_s24 }
   0x5   :  { %159 = vmatprep.subr.bf16.mxu0 %v193_v2  ;;  %v133_v9 = vld [vmem:[%s252_s2] ss:$0 sm:$0xff]  ;;  %s169_s0 = scalar_lea.vmem %s126_s24, 128  ;;  %p174_p1 = scmp.lt.s32.totalorder %s126_s24, %s126_s24 }
   0x6   :  { %p170_p0 = scmp.ne.s32.totalorder %s126_s24, %s169_s0  ;;  %p175_p2 = scmp.lt.s32.totalorder %s169_s0, %s169_s0 }
   0x8   :  { %p176_p3 = por %p175_p2, %p174_p1 }
   0xa   :  { %p177_p4 = pnand %p176_p3, %p170_p0 }
   0xc   :  { %162 = vmatpush3.bf16.xpose.msk.msra.mxu0 %vm157_vm1, %v160_v7 }
  0x13   :  { %153 = vmatmul.mubr.msk.f32.vlgmr.msra.gmra.mrb[0].mxu0 %vm27_vm0, %v15_v8 }
  0xe6   :  { %v109_v10 = vpop.f32.mrb[0].mxu0 }
  0xe7   :  { %v110_v11 = vadd.f32 %v133_v9, %v109_v10  ;;  %v154_v12 = vpop.f32.mrb[1].mxu0 }
  0xe9   :  { %v113_v13 = vmax.f32 %v110_v11, 0.0 }
  0xeb   :  { %v114_v14 = vsub.f32 0.0, %v113_v13 }
  0xed   :  { %v115_v15 = vmul.f32 1.442695, %v114_v14 }
  0xef   :  { %167 = vpow2.f32 %v115_v15 }
  0xf9   :  { %v168_v16 = vpop.eup %167 }
  0xfa   :  { %118 = vst.msk [vmem:[#allocation2] sm:$0xff] %vm117_vm3, %v168_v16 }
  0xfb   :  { %180 = shalt.err (!%p177_p4)
}
  0xfc   :  { %s181_s26 = scalar_lea.hbm %s253_s3, 128 }
  0xfd   :  { %p182_p5 = scmp.ne.s32.totalorder %s253_s3, %s181_s26  ;;  %p185_p6 = scmp.lt.u32.totalorder %s181_s26, %s253_s3 }
  0xff   :  { %p187_p7 = pnand %p185_p6, %p182_p5 }
 0x101   :  { %190 = shalt.err (!%p187_p7)
}
 0x102   :  { %128 = dma.vmem_to_hbm [thread:$0]  %s126_s24, 128, %s253_s3, [#allocation3]  }
 0x103   :  { %191 = dma.done.wait [#allocation3], 128  }
 0x104   :  { %192 = vsyncadd [#allocation3], 4294967168 }
 0x105   :  { %132 = vsyncpa [#allocation3], 1 }

</bundles_post_ra>
